<compile_context>
chip_gen: v7x
topology: tpu7x:2x2x1
jax: 0.10.0
libtpu: 0.0.40
codegen_flags: <defaults>
</compile_context>

<pallas_src>
import functools

import jax
import jax.numpy as jnp
from jax.experimental import pallas as pl
from jax.experimental.pallas import tpu as pltpu


def _cdiv(a, b):
    return -(-a // b)


def _round_up(x, m):
    return ((x + m - 1) // m) * m


def _round_down(x, m):
    return (x // m) * m


def _chip_info():
    """Best-effort (vmem_capacity_bytes, vpu_supports_native_bf16)."""
    kind = ""
    try:
        kind = jax.devices()[0].device_kind.lower()
    except Exception:
        pass
    vmem_cap = 64 * 1024 * 1024  # conservative default (v7x-sized)
    try:
        vmem_cap = int(pltpu.get_tpu_info().vmem_capacity_bytes)
    except Exception:
        if kind and "v7" not in kind:
            vmem_cap = 128 * 1024 * 1024
    native_bf16 = bool(kind) and not any(
        t in kind for t in ("v2", "v3", "v4", "v5"))
    return vmem_cap, native_bf16


# --------------------------------------------------------------------------
# Path A: full class axis per row tile.
# --------------------------------------------------------------------------
def _topk_acc_kernel(pred_ref, label_ref, out_ref, *, top_k, total_n, tile_n,
                     cast_f32):
    i = pl.program_id(0)

    pred = pred_ref[...]                               # (TN, C) native dtype
    if cast_f32:
        pred = pred.astype(jnp.float32)
    labels = label_ref[...]                            # (TN, 1) int32
    tn, c = pred.shape

    # Fused one-hot: true-class score per row via where + lane-max (XLU).
    class_ids = jax.lax.broadcasted_iota(jnp.int32, (tn, c), 1)
    is_true = class_ids == labels                      # (TN, C) bool
    neg_inf = jnp.array(-jnp.inf, pred.dtype)
    true_score = jnp.max(jnp.where(is_true, pred, neg_inf), axis=1,
                         keepdims=True)                # (TN, 1)
    # Out-of-range labels -> -inf -> rank == C -> counted as a miss.

    # Rank = number of strictly greater scores (integer compare-sum).
    rank = jnp.sum((pred > true_score).astype(jnp.int32), axis=1,
                   keepdims=True)                      # (TN, 1) int32
    hit = rank < top_k                                 # (TN, 1) bool

    # Mask rows of a ragged final tile (per-row cost only, (TN,1) shaped).
    row_ids = i * tile_n + jax.lax.broadcasted_iota(jnp.int32, (tn, 1), 0)
    valid = row_ids < total_n
    hits = jnp.sum(jnp.where(hit & valid, 1.0, 0.0).astype(jnp.float32))

    # Lane-dense partial: broadcast the tile's hit count over the whole block
    # (wrapper reads [:, 0, 0]); no iota/where placement ops.
    out_ref[...] = jnp.broadcast_to(hits, out_ref.shape)


# --------------------------------------------------------------------------
# Path B: class axis tiled (inner "arbitrary" grid axis), scratch-carried
# per-row rank count.  true-class score is gathered in the wrapper.
# --------------------------------------------------------------------------
def _topk_acc_ctiled_kernel(pred_ref, ts_ref, out_ref, cnt_ref, *, top_k,
                            total_n, total_c, tile_n, tile_c, cast_f32):
    i = pl.program_id(0)
    j = pl.program_id(1)
    last_j = pl.num_programs(1) - 1

    @pl.when(j == 0)
    def _():
        cnt_ref[...] = jnp.zeros_like(cnt_ref)

    pred = pred_ref[...]                               # (TN, TC) native dtype
    ts = ts_ref[...]                                   # (TN, 1)  native dtype
    if cast_f32:
        pred = pred.astype(jnp.float32)
        ts = ts.astype(jnp.float32)
    tn, tc = pred.shape

    # Mask ragged class columns of the final C tile.
    col_ids = j * tile_c + jax.lax.broadcasted_iota(jnp.int32, (tn, tc), 1)
    gt = (pred > ts) & (col_ids < total_c)
    cnt_ref[...] += jnp.sum(gt.astype(jnp.int32), axis=1, keepdims=True)

    @pl.when(j == last_j)
    def _():
        hit = cnt_ref[...] < top_k                     # (TN, 1) bool
        row_ids = i * tile_n + jax.lax.broadcasted_iota(jnp.int32, (tn, 1), 0)
        valid = row_ids < total_n
        hits = jnp.sum(jnp.where(hit & valid, 1.0, 0.0).astype(jnp.float32))
        out_ref[...] = jnp.broadcast_to(hits, out_ref.shape)


# --------------------------------------------------------------------------
# Wrapper.
# --------------------------------------------------------------------------
def top_k_accuracy_pallas(y_pred, y_true, top_k=1, tile_n=None, tile_c=None):
    n, c = y_pred.shape
    dtype = y_pred.dtype
    itemsize = jnp.dtype(dtype).itemsize
    vmem_cap, native_bf16 = _chip_info()

    # Compute dtype: stay native for f32 always and for bf16 on v6e/v7x; cast
    # to f32 on older generations (no bf16 VPU) and for other dtypes.
    if dtype == jnp.float32:
        cast_f32 = False
    elif dtype == jnp.bfloat16 and native_bf16:
        cast_f32 = False
    else:
        cast_f32 = True
    work_itemsize = 4 if cast_f32 else itemsize

    sub = max(8, 32 // itemsize)          # sublane multiple: 8/16/32
    vmem_budget = min((vmem_cap * 3) // 5, 72 << 20)   # tile-planning budget
    out_bufs = 2 * 8 * 128 * 4

    labels = y_true.astype(jnp.int32).reshape(n, 1)

    # Per-row VMEM cost for path A: double-buffered pred + lane-padded labels
    # (a (tn,1) i32 block occupies tn*512 B per buffer) + ~2 compute temps.
    per_row = 2 * (c * itemsize + 512) + 2 * c * work_itemsize
    use_c_tiling = (tile_c is not None) or (sub * per_row > vmem_budget)

    if not use_c_tiling:
        if tile_n is None:
            rows_budget = max(sub, _round_down(vmem_budget // per_row, sub))
            # Keep >= ~4 row tiles when possible so v7x megacore can share.
            rows_parallel = _round_up(max(1, _cdiv(n, 4)), sub)
            tn = min(rows_budget, rows_parallel)
        else:
            tn = _round_up(int(tile_n), sub)
        tn = max(sub, min(tn, _round_up(n, sub)))
        num_tiles = _cdiv(n, tn)

        tile_bytes = tn * per_row + out_bufs
        vmem_limit = int(min((vmem_cap * 3) // 4,
                             max(32 << 20, tile_bytes + (2 << 20))))

        partials = pl.pallas_call(
            functools.partial(_topk_acc_kernel, top_k=int(top_k), total_n=n,
                              tile_n=tn, cast_f32=cast_f32),
            out_shape=jax.ShapeDtypeStruct((num_tiles, 8, 128), jnp.float32),
            grid=(num_tiles,),
            in_specs=[
                pl.BlockSpec((tn, c), lambda i: (i, 0)),   # pred (native dtype)
                pl.BlockSpec((tn, 1), lambda i: (i, 0)),   # labels
            ],
            out_specs=pl.BlockSpec((1, 8, 128), lambda i: (i, 0, 0)),
            compiler_params=pltpu.CompilerParams(
                dimension_semantics=("parallel",),
                vmem_limit_bytes=vmem_limit,
            ),
            cost_estimate=pl.CostEstimate(
                flops=3 * n * c,
                transcendentals=0,
                bytes_accessed=n * c * itemsize + n * 4
                + num_tiles * 8 * 128 * 4,
            ),
        )(y_pred, labels)
    else:
        # Wide-class path.
        # TODO(synk): out-of-range labels are clamped by take_along_axis here
        # (counted against the clamped class), while the single-pass path
        # counts them as misses; the PyTorch spec assumes in-range labels.
        labels_clamped = jnp.clip(labels, 0, c - 1)
        true_score = jnp.take_along_axis(y_pred, labels_clamped, axis=1)

        tn = sub if tile_n is None else max(sub, _round_up(int(tile_n), sub))
        tn = min(tn, _round_up(n, sub))
        fixed = 3 * tn * 512 + out_bufs    # ts (2 bufs) + count scratch (padded)
        per_col = tn * (2 * itemsize + 2 * work_itemsize)
        if tile_c is None:
            tc = _round_down(max(128, (vmem_budget - fixed) // per_col), 128)
        else:
            tc = _round_up(int(tile_c), 128)
        tc = max(128, min(tc, _round_up(c, 128)))
        num_row_tiles = _cdiv(n, tn)
        num_c_tiles = _cdiv(c, tc)

        tile_bytes = tc * per_col + fixed
        vmem_limit = int(min((vmem_cap * 3) // 4,
                             max(32 << 20, tile_bytes + (2 << 20))))

        partials = pl.pallas_call(
            functools.partial(_topk_acc_ctiled_kernel, top_k=int(top_k),
                              total_n=n, total_c=c, tile_n=tn, tile_c=tc,
                              cast_f32=cast_f32),
            out_shape=jax.ShapeDtypeStruct((num_row_tiles, 8, 128),
                                           jnp.float32),
            grid=(num_row_tiles, num_c_tiles),
            in_specs=[
                pl.BlockSpec((tn, tc), lambda i, j: (i, j)),  # pred tile
                pl.BlockSpec((tn, 1), lambda i, j: (i, 0)),   # true score
            ],
            out_specs=pl.BlockSpec((1, 8, 128), lambda i, j: (i, 0, 0)),
            scratch_shapes=[pltpu.VMEM((tn, 1), jnp.int32)],
            compiler_params=pltpu.CompilerParams(
                dimension_semantics=("parallel", "arbitrary"),
                vmem_limit_bytes=vmem_limit,
            ),
            cost_estimate=pl.CostEstimate(
                flops=3 * n * c,
                transcendentals=0,
                bytes_accessed=n * c * itemsize + n * itemsize
                + num_row_tiles * 8 * 128 * 4,
            ),
        )(y_pred, true_score)

    # Final reduction + division by the GLOBAL N in the wrapper.
    return jnp.sum(partials[:, 0, 0]) / jnp.float32(n)


class TopKAccuracy:
    """JAX/Pallas equivalent of the PyTorch TopKAccuracy module."""

    def __init__(self, top_k=1):
        self.__name__ = f'Top-{top_k} Accu.'
        self.pattern = '{:.3f}'
        self.top_k = top_k

    def __call__(self, y_pred, y_true):
        return top_k_accuracy_pallas(y_pred, y_true, self.top_k)


def _reference_top_k_accuracy(y_pred, y_true, top_k):
    # Pure-JAX reference mirroring torch.topk semantics (no ties expected).
    _, ranks = jax.lax.top_k(y_pred, top_k)                       # (N, top_k)
    y_comp = jnp.broadcast_to(y_true[:, None], ranks.shape)
    return jnp.mean(jnp.sum((ranks == y_comp).astype(jnp.float32), axis=1))


if __name__ == "__main__":
    key = jax.random.PRNGKey(0)
    k1, k2, k3, k4 = jax.random.split(key, 4)

    # Test 1: single tile, f32 (matches the module's typical use).
    N, C, top_k = 8, 32, 3
    y_pred = jax.random.normal(k1, (N, C), dtype=jnp.float32)
    y_true = jax.random.randint(k2, (N,), 0, C, dtype=jnp.int32)
    metric = TopKAccuracy(top_k=top_k)
    acc = jax.block_until_ready(metric(y_pred, y_true))
    ref = _reference_top_k_accuracy(y_pred, y_true, top_k)
    assert abs(float(acc) - float(ref)) < 1e-6, (float(acc), float(ref))

    # Test 2: multiple row tiles + ragged final tile (N=13, tile=8 -> 2 tiles).
    N2, C2, top_k2 = 13, 160, 5
    y_pred2 = jax.random.normal(k3, (N2, C2), dtype=jnp.float32)
    y_true2 = jax.random.randint(k4, (N2,), 0, C2, dtype=jnp.int32)
    acc2 = jax.block_until_ready(
        top_k_accuracy_pallas(y_pred2, y_true2, top_k2, tile_n=8))
    ref2 = _reference_top_k_accuracy(y_pred2, y_true2, top_k2)
    assert abs(float(acc2) - float(ref2)) < 1e-6, (float(acc2), float(ref2))

    # Test 3: bf16 input passes through natively (no wrapper upcast, halved HBM
    # traffic; native bf16 compute on v6e/v7x, f32 cast in-kernel on older
    # chips); compare against the same rank-based formula evaluated in f32.
    y_pred3 = y_pred2.astype(jnp.bfloat16)
    acc3 = jax.block_until_ready(
        top_k_accuracy_pallas(y_pred3, y_true2, top_k2, tile_n=8))
    p32 = y_pred3.astype(jnp.float32)
    ts = jnp.take_along_axis(p32, y_true2[:, None], axis=1)
    rank = jnp.sum((p32 > ts).astype(jnp.int32), axis=1)
    ref3 = jnp.mean((rank < top_k2).astype(jnp.float32))
    assert abs(float(acc3) - float(ref3)) < 1e-6, (float(acc3), float(ref3))

    # Test 4: force the wide-class (C-tiled) path with a ragged class tile
    # (C=160, tile_c=128 -> 2 C tiles) and ragged rows.
    acc4 = jax.block_until_ready(
        top_k_accuracy_pallas(y_pred2, y_true2, top_k2, tile_n=8, tile_c=128))
    assert abs(float(acc4) - float(ref2)) < 1e-6, (float(acc4), float(ref2))

    print("KERNEL_OK")
</pallas_src>

<mosaic_0001>
module attributes {stable_mosaic.version = 11 : i64} {
  func.func @_topk_acc_kernel(%arg0: i32, %arg1: memref<8x32xf32, #tpu.memory_space<vmem>>, %arg2: memref<8x1xi32, #tpu.memory_space<vmem>>, %arg3: memref<1x8x128xf32, #tpu.memory_space<vmem>>) attributes {dimension_semantics = [#tpu.dimension_semantics<parallel>], iteration_bounds = array<i64: 1>, scalar_prefetch = 0 : i64, scratch_operands = 0 : i64, tpu.core_type = #tpu.core_type<tc>, window_params = [{transform_indices = @transform_0, window_bounds = array<i64: 8, 32>}, {transform_indices = @transform_1, window_bounds = array<i64: 8, 1>}, {transform_indices = @transform_2, window_bounds = array<i64: 1, 8, 128>}]} {
    %c0 = arith.constant 0 : index
    %c0_0 = arith.constant 0 : index
    %0 = vector.load %arg1[%c0, %c0_0] : memref<8x32xf32, #tpu.memory_space<vmem>>, vector<8x32xf32>
    %c0_1 = arith.constant 0 : index
    %c0_2 = arith.constant 0 : index
    %1 = vector.load %arg2[%c0_1, %c0_2] : memref<8x1xi32, #tpu.memory_space<vmem>>, vector<8x1xi32>
    %2 = tpu.iota {dimensions = array<i32: 1>} : vector<8x32xi32>
    %3 = vector.broadcast %1 : vector<8x1xi32> to vector<8x32xi32>
    %4 = arith.cmpi eq, %2, %3 : vector<8x32xi32>
    %cst = arith.constant 0xFF800000 : f32
    %5 = vector.broadcast %cst : f32 to vector<8x32xf32>
    %6 = arith.select %4, %0, %5 : vector<8x32xi1>, vector<8x32xf32>
    %cst_3 = arith.constant dense<0xFF800000> : vector<8xf32>
    %7 = vector.multi_reduction <maximumf>, %6, %cst_3 [1] : vector<8x32xf32> to vector<8xf32>
    %8 = vector.shape_cast %7 : vector<8xf32> to vector<8x1xf32>
    %9 = vector.broadcast %8 : vector<8x1xf32> to vector<8x32xf32>
    %10 = arith.cmpf ogt, %0, %9 : vector<8x32xf32>
    %11 = arith.extui %10 : vector<8x32xi1> to vector<8x32xi32>
    %cst_4 = arith.constant dense<0> : vector<8xi32>
    %12 = vector.multi_reduction <add>, %11, %cst_4 [1] : vector<8x32xi32> to vector<8xi32>
    %13 = vector.shape_cast %12 : vector<8xi32> to vector<8x1xi32>
    %c3_i32 = arith.constant 3 : i32
    %14 = vector.broadcast %c3_i32 : i32 to vector<8x1xi32>
    %15 = arith.cmpi slt, %13, %14 : vector<8x1xi32>
    %c8_i32 = arith.constant 8 : i32
    %16 = arith.muli %arg0, %c8_i32 : i32
    %17 = tpu.iota {dimensions = array<i32: 0>} : vector<8x1xi32>
    %18 = vector.broadcast %16 : i32 to vector<8x1xi32>
    %19 = arith.addi %18, %17 : vector<8x1xi32>
    %c8_i32_5 = arith.constant 8 : i32
    %20 = vector.broadcast %c8_i32_5 : i32 to vector<8x1xi32>
    %21 = arith.cmpi slt, %19, %20 : vector<8x1xi32>
    %22 = arith.andi %15, %21 : vector<8x1xi1>
    %cst_6 = arith.constant 1.000000e+00 : f32
    %cst_7 = arith.constant 0.000000e+00 : f32
    %23 = vector.broadcast %cst_6 : f32 to vector<8x1xf32>
    %24 = vector.broadcast %cst_7 : f32 to vector<8x1xf32>
    %25 = arith.select %22, %23, %24 : vector<8x1xi1>, vector<8x1xf32>
    %26 = vector.shape_cast %25 : vector<8x1xf32> to vector<1x8x1xf32>
    %cst_8 = arith.constant dense<0.000000e+00> : vector<1xf32>
    %27 = vector.multi_reduction <add>, %26, %cst_8 [1, 2] : vector<1x8x1xf32> to vector<1xf32>
    %28 = vector.shape_cast %27 : vector<1xf32> to vector<1x1x1xf32>
    %29 = vector.extract %28[0, 0, 0] : f32 from vector<1x1x1xf32>
    %30 = vector.broadcast %29 : f32 to vector<1x8x128xf32>
    %c0_9 = arith.constant 0 : index
    %c0_10 = arith.constant 0 : index
    %c0_11 = arith.constant 0 : index
    %31 = vector.load %arg3[%c0_9, %c0_10, %c0_11] : memref<1x8x128xf32, #tpu.memory_space<vmem>>, vector<1x8x128xf32>
    tpu.vector_store %arg3[%c0_9, %c0_10, %c0_11], %30 {strides = array<i32>} : memref<1x8x128xf32, #tpu.memory_space<vmem>>, vector<1x8x128xf32>,
    return
  }
  func.func @transform_0(%arg0: i32) -> (i32, i32) {
    %c0_i32 = arith.constant 0 : i32
    %c0_i32_0 = arith.constant 0 : i32
    return %arg0, %c0_i32 : i32, i32
  }
  func.func @transform_1(%arg0: i32) -> (i32, i32) {
    %c0_i32 = arith.constant 0 : i32
    %c0_i32_0 = arith.constant 0 : i32
    return %arg0, %c0_i32 : i32, i32
  }
  func.func @transform_2(%arg0: i32) -> (i32, i32, i32) {
    %c0_i32 = arith.constant 0 : i32
    %c0_i32_0 = arith.constant 0 : i32
    %c0_i32_1 = arith.constant 0 : i32
    return %arg0, %c0_i32, %c0_i32_0 : i32, i32, i32
  }
}

</mosaic_0001>

<bundles_post_ra>
// kernel: tpu_custom_call.1
= control target key start
LH: loop header
LB: loop body
LE: loop exit
PB: predicated region body
PF: predicated region fallthrough
CT: control target
= control target key end

     0   :  { %s142_s0 = inlined_call_operand.vmem [shape: f32[8,32], index: 0, kind: input, shape index: {}]   ;;  %s143_s1 = inlined_call_operand.vmem [shape: s32[8,1], index: 1, kind: input, shape index: {}]   ;;  %s144_s2 = inlined_call_operand.hbm [shape: f32[1,8,128], index: 2, kind: output, shape index: {}]  }
   0x1   :  { %v13_v0 = vld [vmem:[%s143_s1] sm:$0xff] }
   0x2   :  { %7 = vsyncpa [#allocation3], 0  ;;  %v106_v1 = vmov 0   ;;  %v14_v2 = vlaneseq  ;;  %v12_v4 = vld [vmem:[%s142_s0] sm:$0xff]  ;;  %vm21_vm0 = vcmask 261120   ;;  %vm49_vm3 = vcmask 7168  }
   0x3   :  { %81 = vset.pattern.permute.xlu0 %v106_v1  ;;  %v107_v21 = vmov 0.0   ;;  %s108_s0 = smov [#allocation2]  }
   0x4   :  { %17 = vperm.xlu0 %81, %v13_v0   ;;  %v15_v3 = vand.u32 127, %v14_v2  ;;  %s68_s1 = sshll.u32 %s108_s0, 4  ;;  %s69_s1 = int_to_ptr.vmem [resolvable:$true] %s68_s1 }
   0x5   :  { %s82_s14 = scalar_lea.vmem %s69_s1, 128  ;;  %p87_p1 = scmp.lt.s32.totalorder %s69_s1, %s69_s1 }
   0x6   :  { %p83_p0 = scmp.ne.s32.totalorder %s69_s1, %s82_s14  ;;  %p88_p2 = scmp.lt.s32.totalorder %s82_s14, %s82_s14 }
   0x8   :  { %p89_p3 = por %p88_p2, %p87_p1 }
   0xa   :  { %p90_p4 = pnand %p89_p3, %p83_p0 }
  0x83   :  { %v18_v5 = vpop.permute.xlu0 %17 }
  0x84   :  { %vm19_vm1 = vcmp.eq.s32.totalorder %v15_v3, %v18_v5 }
  0x85   :  { %v20_v6 = vsel %vm19_vm1, %v12_v4, -inf }
  0x86   :  { %v22_v7 = vsel %vm21_vm0, %v20_v6, -inf }
  0x87   :  { %23 = vmax.xlane.f32.xlu0 %v22_v7 }
 0x114   :  { %v24_v8 = vpop.xlane.xlu0 %23 }
 0x115   :  { %vm25_vm2 = vcmp.gt.f32.partialorder %v12_v4, %v24_v8 }
 0x116   :  { %v26_v9 = vsel %vm25_vm2, 1, %v106_v1 }
 0x117   :  { %v27_v10 = vsel %vm21_vm0, %v26_v9, 0 }
 0x118   :  { %v29_v11 = vshrl.u32 %v27_v10, 16  ;;  %v28_v13 = vand.u32 65535, %v27_v10 }
 0x11a   :  { %v31_v12 = vcvt.s32.f32 %v29_v11  ;;  %v30_v14 = vcvt.s32.f32 %v28_v13 }
 0x11c   :  { %34 = vadd.xlane.f32.xlu1 %v31_v12 }
 0x120   :  { %32 = vadd.xlane.f32.xlu1 %v30_v14 }
 0x1a9   :  { %v35_v15 = vpop.xlane.xlu1 %34 }
 0x1aa   :  { %v37_v16 = vcvt.f32.s32 %v35_v15 }
 0x1ac   :  { %v38_v18 = vshll.u32 %v37_v16, 16 }
 0x1ad   :  { %v33_v17 = vpop.xlane.xlu1 %32 }
 0x1ae   :  { %v36_v19 = vcvt.f32.s32 %v33_v17 }
 0x1b0   :  { %v39_v20 = vadd.s32 %v38_v18, %v36_v19 }
 0x1b2   :  { %vm40_vm4 = vcmp.lt.s32.totalorder %v39_v20, 3 }
 0x1b3   :  { %v48_v22 = vsel %vm40_vm4, 1.0, %v107_v21 }
 0x1b4   :  { %v50_v23 = vsel %vm49_vm3, %v48_v22, 0.0 }
 0x1b5   :  { %51 = vadd.xlane.f32.xlu1 %v50_v23 }
 0x242   :  { %v52_v24 = vpop.xlane.xlu1 %51 }
 0x243   :  { %v53_v25 = vrot.slane %v52_v24, 4 }
 0x245   :  { %v54_v26 = vadd.f32 %v53_v25, %v52_v24 }
 0x247   :  { %v55_v27 = vrot.slane %v54_v26, 2 }
 0x249   :  { %v56_v28 = vadd.f32 %v55_v27, %v54_v26 }
 0x24b   :  { %v57_v29 = vrot.slane %v56_v28, 1 }
 0x24d   :  { %v58_v30 = vadd.f32 %v57_v29, %v56_v28 }
 0x24f   :  { %76 = vpush %v58_v30 }
 0x280   :  { %s77_s13 = spop %76 }
 0x281   :  { %v60_v31 = vstv %s77_s13 }
 0x282   :  { %61 = vst [vmem:[#allocation2] sm:$0xff] %v60_v31 }
 0x283   :  { %93 = shalt.err (!%p90_p4)
}
 0x284   :  { %s94_s17 = scalar_lea.hbm %s144_s2, 128 }
 0x285   :  { %p95_p5 = scmp.ne.s32.totalorder %s144_s2, %s94_s17  ;;  %p98_p6 = scmp.lt.u32.totalorder %s94_s17, %s144_s2 }
 0x287   :  { %p100_p7 = pnand %p98_p6, %p95_p5 }
 0x289   :  { %103 = shalt.err (!%p100_p7)
}
 0x28a   :  { %71 = dma.vmem_to_hbm [thread:$0]  %s69_s1, 128, %s144_s2, [#allocation3]  }
 0x28b   :  { %104 = dma.done.wait [#allocation3], 128  }
 0x28c   :  { %105 = vsyncadd [#allocation3], 4294967168 }
 0x28d   :  { %75 = vsyncpa [#allocation3], 1 }

</bundles_post_ra>
